<compile_context>
chip_gen: v6e
topology: v6e:2x2x1
jax: 0.10.0
libtpu: 0.0.40
codegen_flags: <defaults>
</compile_context>

<pallas_src>
import functools

import jax
import jax.numpy as jnp
from jax.experimental import pallas as pl
from jax.experimental.pallas import tpu as pltpu


def _vmem_capacity_bytes() -> int:
    """Physical per-core VMEM; conservative 64 MiB (v7x) fallback."""
    try:
        info = pltpu.get_tpu_info()
        cap = getattr(info, "vmem_capacity_bytes", None)
        if cap:
            return int(cap)
    except Exception:
        pass
    return 64 * 1024 * 1024


def _focal_loss_kernel(logits_ref, tgt_ref, out_ref, acc_ref, *,
                       gamma: float, n_total: int, block_rows: int,
                       n_inner: int):
    i = pl.program_id(0)            # "parallel" super-block (megacore axis)
    j = pl.program_id(1)            # "arbitrary" reduction over row tiles
    n_in = pl.num_programs(1)

    @pl.when(j == 0)
    def _init():
        acc_ref[...] = jnp.zeros_like(acc_ref)

    x = logits_ref[...].astype(jnp.float32)          # (TN, C) -> f32 in regs
    tgt = tgt_ref[...]                               # (TN, 1) int32
    bn, c = x.shape

    # Mask rows past the true batch size (partial last tile and the fully-dummy
    # clamped tile when the tile count is odd).  Padded/duplicated tiles hold
    # clamped copies of *real* array data (finite), so exp/log below never see
    # NaN/Inf even before the select masks them out.
    blk = i * n_inner + j                            # unclamped global block id
    row = jax.lax.broadcasted_iota(jnp.int32, (bn, 1), 0)
    valid = (blk * block_rows + row) < n_total       # (TN, 1) bool

    # Numerically-stable log-sum-exp over the class (lane) axis.
    m = jnp.max(x, axis=-1, keepdims=True)           # (TN, 1)
    lse = jnp.log(jnp.sum(jnp.exp(x - m), axis=-1, keepdims=True)) + m

    # Target-class logit via a (1, C) lane-iota compare broadcast against tgt
    # (no materialized (TN, C) int32 iota, no f32 one-hot temp).
    col = jax.lax.broadcasted_iota(jnp.int32, (1, c), 1)
    x_t = jnp.sum(jnp.where(col == tgt, x, 0.0), axis=-1, keepdims=True)

    # Per-sample CE; clamp >= 0 so p <= 1 (NaN-safe near logp == 0; matches
    # PyTorch up to last-bit rounding).
    logp = jnp.maximum(lse - x_t, 0.0)
    p = jnp.exp(-logp)
    w = 1.0 - p

    # (1 - p)**gamma without a float-exponent power on the EUP.
    if float(gamma) == 2.0:
        wg = w * w                                   # plain VPU multiply
    elif float(gamma) == int(gamma) and gamma >= 0:
        wg = jnp.ones_like(w)
        for _ in range(int(gamma)):
            wg = wg * w
    else:
        wg = jnp.exp(gamma * jnp.log(jnp.maximum(w, 1e-30)))

    # Per-row partial accumulation: a VPU add per step; the cross-lane reduce
    # to a scalar happens only once per super-block in the finalize below.
    acc_ref[...] += jnp.where(valid, wg * logp, 0.0)

    @pl.when(j == n_in - 1)
    def _finalize():
        total = jnp.sum(acc_ref[...])                # this super-block's sum
        # Lane-dense (1,8,128) tile, uniformly filled; wrapper reads [:,0,0].
        out_ref[...] = jnp.full(out_ref.shape, total, jnp.float32)


def focal_loss(logits: jax.Array, targets: jax.Array, gamma: float = 2.0,
               block_rows: int | None = None) -> jax.Array:
    """logits: (N, C) float (any dtype), targets: (N,) int class indices.

    Returns a scalar f32 loss.  Logits are NOT cast in the wrapper; the kernel
    casts each tile to f32 after the DMA, so HBM traffic stays at the native
    dtype's width (bf16 halves the bytes moved).
    """
    n, c = logits.shape
    tgt2d = targets.reshape(n, 1).astype(jnp.int32)
    itemsize = jnp.dtype(logits.dtype).itemsize

    # Sublane packing of the logits dtype (f32 -> 8, bf16 -> 16, int8 -> 32).
    pack = max(8, 32 // itemsize)

    # Corrected VMEM budget: double-buffered native-dtype input tile plus ~16
    # B/elem of f32 in-kernel temporaries (x_f32, exp(x-m), select result,
    # slack), capped at 75% of physical VMEM.
    vmem_cap = int(_vmem_capacity_bytes() * 3 // 4)
    bytes_per_row = c * (2 * itemsize + 16) + 64
    rows_fit = max(pack, vmem_cap // bytes_per_row)

    # Aim for >= ~8 MiB of logits per grid step (pipeline-overhead amortization)
    # rather than a fixed small row cap.
    rows_by_step = max(pack, (8 * 1024 * 1024) // max(1, c * itemsize))

    tn = min(n, rows_fit, rows_by_step)
    if block_rows is not None:                       # explicit override (tests)
        tn = min(tn, max(pack, int(block_rows)))
    if tn < n:
        tn = max(pack, (tn // pack) * pack)          # gridded: packing-aligned
    else:
        tn = n                                       # single full-array block

    total_blocks = pl.cdiv(n, tn)
    n_super = min(total_blocks, 2)                   # one super-block per TC (v7x)
    n_inner = pl.cdiv(total_blocks, n_super)

    def _row_block_map(i, j):
        # Clamp so the DMA stays in-bounds; out-of-range grid points are fully
        # masked inside the kernel (valid == False) and contribute 0.
        return (jnp.minimum(i * n_inner + j, total_blocks - 1), 0)

    kernel = functools.partial(_focal_loss_kernel, gamma=float(gamma),
                               n_total=n, block_rows=tn, n_inner=n_inner)

    cost = pl.CostEstimate(
        flops=int(10 * n * c),
        transcendentals=int(n * c + 3 * n),
        bytes_accessed=int(n * c * itemsize + 4 * n + n_super * 8 * 128 * 4),
    )

    out = pl.pallas_call(
        kernel,
        out_shape=jax.ShapeDtypeStruct((n_super, 8, 128), jnp.float32),
        grid_spec=pltpu.PrefetchScalarGridSpec(
            num_scalar_prefetch=0,
            grid=(n_super, n_inner),
            in_specs=[
                pl.BlockSpec((tn, c), _row_block_map),
                # (tn, 1) int32 targets: lane-narrow per-step DMA, accepted
                # knowingly -- it is 4*tn bytes next to the MB-scale logits tile.
                pl.BlockSpec((tn, 1), _row_block_map),
            ],
            out_specs=pl.BlockSpec((1, 8, 128), lambda i, j: (i, 0, 0)),
            scratch_shapes=[pltpu.VMEM((tn, 1), jnp.float32)],
        ),
        compiler_params=pltpu.CompilerParams(
            dimension_semantics=("parallel", "arbitrary"),
            vmem_limit_bytes=int(vmem_cap)),
        cost_estimate=cost,
    )(logits, tgt2d)

    partials = out[:, 0, 0]                          # one f32 per super-block
    return jnp.sum(partials) / jnp.float32(n)


def _reference_focal_loss(logits, targets, gamma=2.0):
    # pure-JAX reference (mirrors PyTorch CrossEntropyLoss + focal weighting)
    logp_all = jax.nn.log_softmax(logits.astype(jnp.float32), axis=-1)
    logp = -jnp.take_along_axis(logp_all, targets[:, None], axis=-1)[:, 0]
    p = jnp.exp(-logp)
    return jnp.mean((1.0 - p) ** gamma * logp)


if __name__ == "__main__":
    key = jax.random.PRNGKey(0)
    k1, k2, k3, k4, k5, k6 = jax.random.split(key, 6)

    # Case 1: small single-block shape (batch=8, classes=16), f32 logits.
    N, C = 8, 16
    logits = jax.random.normal(k1, (N, C), dtype=jnp.float32)
    targets = jax.random.randint(k2, (N,), 0, C, dtype=jnp.int32)
    loss = focal_loss(logits, targets, gamma=2.0)
    jax.block_until_ready(loss)
    ref = _reference_focal_loss(logits, targets, gamma=2.0)
    assert jnp.allclose(loss, ref, rtol=1e-4, atol=1e-5), (loss, ref)

    # Case 2: gridded + megacore path: 2 super-blocks x 2 inner tiles, partial
    # last tile (N=50, TN=16), bf16 logits fed natively (cast to f32 in-kernel).
    N2, C2 = 50, 40
    logits2 = jax.random.normal(k3, (N2, C2), dtype=jnp.float32).astype(jnp.bfloat16)
    targets2 = jax.random.randint(k4, (N2,), 0, C2, dtype=jnp.int32)
    loss2 = focal_loss(logits2, targets2, gamma=2.0, block_rows=16)
    jax.block_until_ready(loss2)
    ref2 = _reference_focal_loss(logits2, targets2, gamma=2.0)
    assert jnp.allclose(loss2, ref2, rtol=1e-4, atol=1e-5), (loss2, ref2)

    # Case 3: odd number of row tiles (3) split over 2 super-blocks -> one
    # clamped, fully-masked dummy tile on the second super-block.
    N3, C3 = 40, 24
    logits3 = jax.random.normal(k5, (N3, C3), dtype=jnp.float32)
    targets3 = jax.random.randint(k6, (N3,), 0, C3, dtype=jnp.int32)
    loss3 = focal_loss(logits3, targets3, gamma=2.0, block_rows=16)
    jax.block_until_ready(loss3)
    ref3 = _reference_focal_loss(logits3, targets3, gamma=2.0)
    assert jnp.allclose(loss3, ref3, rtol=1e-4, atol=1e-5), (loss3, ref3)

    print("KERNEL_OK")
</pallas_src>

<mosaic_0001>
module attributes {stable_mosaic.version = 11 : i64} {
  func.func @_focal_loss_kernel(%arg0: i32, %arg1: i32, %arg2: memref<8x16xf32, #tpu.memory_space<vmem>>, %arg3: memref<8x1xi32, #tpu.memory_space<vmem>>, %arg4: memref<1x8x128xf32, #tpu.memory_space<vmem>>, %arg5: memref<8x1xf32, #tpu.memory_space<vmem>>) attributes {dimension_semantics = [#tpu.dimension_semantics<parallel>, #tpu.dimension_semantics<arbitrary>], iteration_bounds = array<i64: 1, 1>, scalar_prefetch = 0 : i64, scratch_operands = 1 : i64, tpu.core_type = #tpu.core_type<tc>, window_params = [{transform_indices = @transform_0, window_bounds = array<i64: 8, 16>}, {transform_indices = @transform_1, window_bounds = array<i64: 8, 1>}, {transform_indices = @transform_2, window_bounds = array<i64: 1, 8, 128>}]} {
    %c0_i32 = arith.constant 0 : i32
    %0 = arith.cmpi eq, %arg1, %c0_i32 : i32
    %1 = arith.extui %0 : i1 to i32
    %c0_i32_0 = arith.constant 0 : i32
    %2 = arith.cmpi ne, %1, %c0_i32_0 : i32
    scf.if %2 {
      %cst_18 = arith.constant 0.000000e+00 : f32
      %48 = vector.broadcast %cst_18 : f32 to vector<8x1xf32>
      %c0_19 = arith.constant 0 : index
      %c0_20 = arith.constant 0 : index
      %49 = vector.load %arg5[%c0_19, %c0_20] : memref<8x1xf32, #tpu.memory_space<vmem>>, vector<8x1xf32>
      tpu.vector_store %arg5[%c0_19, %c0_20], %48 {strides = array<i32>} : memref<8x1xf32, #tpu.memory_space<vmem>>, vector<8x1xf32>,
    } else {
    }
    %c0 = arith.constant 0 : index
    %c0_1 = arith.constant 0 : index
    %3 = vector.load %arg2[%c0, %c0_1] : memref<8x16xf32, #tpu.memory_space<vmem>>, vector<8x16xf32>
    %c0_2 = arith.constant 0 : index
    %c0_3 = arith.constant 0 : index
    %4 = vector.load %arg3[%c0_2, %c0_3] : memref<8x1xi32, #tpu.memory_space<vmem>>, vector<8x1xi32>
    %c1_i32 = arith.constant 1 : i32
    %5 = arith.muli %arg0, %c1_i32 : i32
    %6 = arith.addi %5, %arg1 : i32
    %7 = tpu.iota {dimensions = array<i32: 0>} : vector<8x1xi32>
    %c8_i32 = arith.constant 8 : i32
    %8 = arith.muli %6, %c8_i32 : i32
    %9 = vector.broadcast %8 : i32 to vector<8x1xi32>
    %10 = arith.addi %9, %7 : vector<8x1xi32>
    %c8_i32_4 = arith.constant 8 : i32
    %11 = vector.broadcast %c8_i32_4 : i32 to vector<8x1xi32>
    %12 = arith.cmpi slt, %10, %11 : vector<8x1xi32>
    %cst = arith.constant dense<0xFF800000> : vector<8xf32>
    %13 = vector.multi_reduction <maximumf>, %3, %cst [1] : vector<8x16xf32> to vector<8xf32>
    %14 = vector.shape_cast %13 : vector<8xf32> to vector<8x1xf32>
    %15 = vector.broadcast %14 : vector<8x1xf32> to vector<8x16xf32>
    %16 = arith.subf %3, %15 : vector<8x16xf32>
    %17 = math.exp %16 : vector<8x16xf32>
    %cst_5 = arith.constant dense<0.000000e+00> : vector<8xf32>
    %18 = vector.multi_reduction <add>, %17, %cst_5 [1] : vector<8x16xf32> to vector<8xf32>
    %19 = vector.shape_cast %18 : vector<8xf32> to vector<8x1xf32>
    %20 = math.log %19 : vector<8x1xf32>
    %21 = arith.addf %20, %14 : vector<8x1xf32>
    %22 = tpu.iota {dimensions = array<i32: 1>} : vector<1x16xi32>
    %23 = vector.broadcast %22 : vector<1x16xi32> to vector<8x16xi32>
    %24 = vector.broadcast %4 : vector<8x1xi32> to vector<8x16xi32>
    %25 = arith.cmpi eq, %23, %24 : vector<8x16xi32>
    %cst_6 = arith.constant 0.000000e+00 : f32
    %26 = vector.broadcast %cst_6 : f32 to vector<8x16xf32>
    %27 = arith.select %25, %3, %26 : vector<8x16xi1>, vector<8x16xf32>
    %cst_7 = arith.constant dense<0.000000e+00> : vector<8xf32>
    %28 = vector.multi_reduction <add>, %27, %cst_7 [1] : vector<8x16xf32> to vector<8xf32>
    %29 = vector.shape_cast %28 : vector<8xf32> to vector<8x1xf32>
    %30 = arith.subf %21, %29 : vector<8x1xf32>
    %cst_8 = arith.constant 0.000000e+00 : f32
    %31 = vector.broadcast %cst_8 : f32 to vector<8x1xf32>
    %32 = arith.maximumf %30, %31 : vector<8x1xf32>
    %cst_9 = arith.constant 0.000000e+00 : f32
    %33 = vector.broadcast %cst_9 : f32 to vector<8x1xf32>
    %34 = arith.subf %33, %32 : vector<8x1xf32>
    %35 = math.exp %34 : vector<8x1xf32>
    %cst_10 = arith.constant 1.000000e+00 : f32
    %36 = vector.broadcast %cst_10 : f32 to vector<8x1xf32>
    %37 = arith.subf %36, %35 : vector<8x1xf32>
    %38 = arith.mulf %37, %37 : vector<8x1xf32>
    %c0_11 = arith.constant 0 : index
    %c0_12 = arith.constant 0 : index
    %39 = vector.load %arg5[%c0_11, %c0_12] : memref<8x1xf32, #tpu.memory_space<vmem>>, vector<8x1xf32>
    %40 = arith.mulf %38, %32 : vector<8x1xf32>
    %cst_13 = arith.constant 0.000000e+00 : f32
    %41 = vector.broadcast %cst_13 : f32 to vector<8x1xf32>
    %42 = arith.select %12, %40, %41 : vector<8x1xi1>, vector<8x1xf32>
    %43 = arith.addf %39, %42 : vector<8x1xf32>
    %c0_14 = arith.constant 0 : index
    %c0_15 = arith.constant 0 : index
    %44 = vector.load %arg5[%c0_14, %c0_15] : memref<8x1xf32, #tpu.memory_space<vmem>>, vector<8x1xf32>
    tpu.vector_store %arg5[%c0_14, %c0_15], %43 {strides = array<i32>} : memref<8x1xf32, #tpu.memory_space<vmem>>, vector<8x1xf32>,
    %c0_i32_16 = arith.constant 0 : i32
    %45 = arith.cmpi eq, %arg1, %c0_i32_16 : i32
    %46 = arith.extui %45 : i1 to i32
    %c0_i32_17 = arith.constant 0 : i32
    %47 = arith.cmpi ne, %46, %c0_i32_17 : i32
    scf.if %47 {
      %c0_18 = arith.constant 0 : index
      %c0_19 = arith.constant 0 : index
      %48 = vector.load %arg5[%c0_18, %c0_19] : memref<8x1xf32, #tpu.memory_space<vmem>>, vector<8x1xf32>
      %49 = vector.shape_cast %48 : vector<8x1xf32> to vector<1x8x1xf32>
      %cst_20 = arith.constant dense<0.000000e+00> : vector<1xf32>
      %50 = vector.multi_reduction <add>, %49, %cst_20 [1, 2] : vector<1x8x1xf32> to vector<1xf32>
      %51 = vector.shape_cast %50 : vector<1xf32> to vector<1x1x1xf32>
      %52 = vector.extract %51[0, 0, 0] : f32 from vector<1x1x1xf32>
      %53 = vector.broadcast %52 : f32 to vector<1x8x128xf32>
      %c0_21 = arith.constant 0 : index
      %c0_22 = arith.constant 0 : index
      %c0_23 = arith.constant 0 : index
      %54 = vector.load %arg4[%c0_21, %c0_22, %c0_23] : memref<1x8x128xf32, #tpu.memory_space<vmem>>, vector<1x8x128xf32>
      tpu.vector_store %arg4[%c0_21, %c0_22, %c0_23], %53 {strides = array<i32>} : memref<1x8x128xf32, #tpu.memory_space<vmem>>, vector<1x8x128xf32>,
    } else {
    }
    return
  }
  func.func @transform_0(%arg0: i32, %arg1: i32) -> (i32, i32) {
    %c1_i32 = arith.constant 1 : i32
    %0 = arith.muli %arg0, %c1_i32 : i32
    %1 = arith.addi %0, %arg1 : i32
    %c0_i32 = arith.constant 0 : i32
    %2 = arith.minsi %1, %c0_i32 : i32
    %c0_i32_0 = arith.constant 0 : i32
    %c0_i32_1 = arith.constant 0 : i32
    return %2, %c0_i32_0 : i32, i32
  }
  func.func @transform_1(%arg0: i32, %arg1: i32) -> (i32, i32) {
    %c1_i32 = arith.constant 1 : i32
    %0 = arith.muli %arg0, %c1_i32 : i32
    %1 = arith.addi %0, %arg1 : i32
    %c0_i32 = arith.constant 0 : i32
    %2 = arith.minsi %1, %c0_i32 : i32
    %c0_i32_0 = arith.constant 0 : i32
    %c0_i32_1 = arith.constant 0 : i32
    return %2, %c0_i32_0 : i32, i32
  }
  func.func @transform_2(%arg0: i32, %arg1: i32) -> (i32, i32, i32) {
    %c0_i32 = arith.constant 0 : i32
    %c0_i32_0 = arith.constant 0 : i32
    %c0_i32_1 = arith.constant 0 : i32
    return %arg0, %c0_i32, %c0_i32_0 : i32, i32, i32
  }
}

</mosaic_0001>

<bundles_post_ra>
// kernel: tpu_custom_call.1
= control target key start
LH: loop header
LB: loop body
LE: loop exit
PB: predicated region body
PF: predicated region fallthrough
CT: control target
= control target key end

     0   :  { %vm81_vm0 = vcmask 130048   ;;  %s226_s0 = inlined_call_operand.vmem [shape: f32[8,16], index: 0, kind: input, shape index: {}]   ;;  %s227_s1 = inlined_call_operand.vmem [shape: s32[8,1], index: 1, kind: input, shape index: {}]   ;;  %s228_s2 = inlined_call_operand.hbm [shape: f32[1,8,128], index: 2, kind: output, shape index: {}]  }
   0x1   :  { %v72_v0 = vld [vmem:[%s226_s0] sm:$0xff] }
   0x2   :  { %7 = vsyncpa [#allocation4], 0  ;;  %v82_v1 = vsel %vm81_vm0, %v72_v0, -inf  ;;  %v193_v2 = vmov 0   ;;  %v73_v3 = vld [vmem:[%s227_s1] sm:$0xff]  ;;  %v94_v7 = vlaneseq  ;;  %vm70_vm2 = vcmask 7168  }
   0x3   :  { %164 = vset.pattern.permute.xlu0 %v193_v2  ;;  %v194_v14 = vmov 0.0   ;;  %s195_s0 = smov [#allocation3]  }
   0x4   :  { %83 = vmax.xlane.f32.xlu0 %v82_v1  ;;  %v95_v8 = vand.u32 127, %v94_v7  ;;  %71 = vst.msk [vmem:[#allocation2] sm:$0xff] %vm70_vm2, %v194_v14  ;;  %s139_s1 = sshll.u32 %s195_s0, 4  ;;  %s140_s1 = int_to_ptr.vmem [resolvable:$true] %s139_s1 }
   0x5   :  { %s171_s14 = scalar_lea.vmem %s140_s1, 128  ;;  %p176_p1 = scmp.lt.s32.totalorder %s140_s1, %s140_s1 }
   0x6   :  { %p172_p0 = scmp.ne.s32.totalorder %s140_s1, %s171_s14  ;;  %p177_p2 = scmp.lt.s32.totalorder %s171_s14, %s171_s14 }
   0x8   :  { %p178_p3 = por %p177_p2, %p176_p1 }
   0xa   :  { %p179_p4 = pnand %p178_p3, %p172_p0 }
   0xb   :  { %v111_v27 = vld [vmem:[#allocation2] sm:$0xff] }
  0x1a   :  { %97 = vperm.xlu0 %164, %v73_v3  }
  0x8d   :  { %v84_v4 = vpop.xlane.xlu0 %83 }
  0x8e   :  { %v85_v5 = vsub.f32 %v72_v0, %v84_v4 }
  0x90   :  { %v86_v6 = vmul.f32 1.442695, %v85_v5 }
  0x92   :  { %165 = vpow2.f32 %v86_v6 }
  0x95   :  { %v98_v9 = vpop.permute.xlu0 %97 }
  0x96   :  { %vm99_vm1 = vcmp.eq.s32.totalorder %v95_v8, %v98_v9 }
  0x97   :  { %v100_v11 = vsel %vm99_vm1, %v72_v0, 0.0 }
  0x98   :  { %v101_v13 = vsel %vm81_vm0, %v100_v11, 0.0 }
  0x9f   :  { %v166_v10 = vpop.eup %165 }
  0xa0   :  { %v88_v12 = vsel %vm81_vm0, %v166_v10, 0.0 }
  0xa1   :  { %89 = vadd.xlane.f32.xlu1 %v88_v12 }
  0xa5   :  { %102 = vadd.xlane.f32.xlu1 %v101_v13 }
 0x12a   :  { %v90_v15 = vpop.xlane.xlu1 %89 }
 0x12b   :  { %167 = vlog2.f32 %v90_v15 }
 0x12e   :  { %v103_v18 = vpop.xlane.xlu1 %102 }
 0x138   :  { %v168_v16 = vpop.eup %167 }
 0x139   :  { %v92_v17 = vmul.f32 0.6931472, %v168_v16 }
 0x13b   :  { %v93_v19 = vadd.f32 %v92_v17, %v84_v4 }
 0x13d   :  { %v104_v20 = vsub.f32 %v93_v19, %v103_v18 }
 0x13f   :  { %v105_v21 = vmax.f32 %v104_v20, 0.0 }
 0x141   :  { %v106_v22 = vsub.f32 0.0, %v105_v21 }
 0x143   :  { %v107_v23 = vmul.f32 1.442695, %v106_v22 }
 0x145   :  { %169 = vpow2.f32 %v107_v23 }
 0x152   :  { %v170_v24 = vpop.eup %169 }
 0x153   :  { %v109_v25 = vsub.f32 1.0, %v170_v24 }
 0x155   :  { %v110_v26 = vmul.f32 %v109_v25, %v109_v25 }
 0x157   :  { %v112_v28 = vmul.f32 %v110_v26, %v105_v21 }
 0x159   :  { %v114_v29 = vadd.f32 %v112_v28, %v111_v27 }
 0x15b   :  { %116 = vst.msk [vmem:[#allocation2] sm:$0xff] %vm70_vm2, %v114_v29 }
 0x162   :  { %v120_v30 = vld [vmem:[#allocation2] sm:$0xff] }
 0x163   :  { %v121_v31 = vsel %vm70_vm2, %v120_v30, 0.0 }
 0x164   :  { %122 = vadd.xlane.f32.xlu1 %v121_v31 }
 0x1ed   :  { %v123_v32 = vpop.xlane.xlu1 %122 }
 0x1ee   :  { %v124_v33 = vrot.slane %v123_v32, 4 }
 0x1f0   :  { %v125_v34 = vadd.f32 %v124_v33, %v123_v32 }
 0x1f2   :  { %v126_v35 = vrot.slane %v125_v34, 2 }
 0x1f4   :  { %v127_v36 = vadd.f32 %v126_v35, %v125_v34 }
 0x1f6   :  { %v128_v37 = vrot.slane %v127_v36, 1 }
 0x1f8   :  { %v129_v38 = vadd.f32 %v128_v37, %v127_v36 }
 0x1fa   :  { %159 = vpush %v129_v38 }
 0x22b   :  { %s160_s13 = spop %159 }
 0x22c   :  { %v131_v39 = vstv %s160_s13 }
 0x22d   :  { %132 = vst [vmem:[#allocation3] sm:$0xff] %v131_v39 }
 0x22e   :  { %182 = shalt.err (!%p179_p4)
}
 0x22f   :  { %142 = dma.vmem_to_hbm [thread:$0]  %s140_s1, 128, %s228_s2, [#allocation4]  }
 0x230   :  { %191 = dma.done.wait [#allocation4], 128  }
 0x231   :  { %192 = vsyncadd [#allocation4], 4294967168 }
 0x232   :  { %146 = vsyncpa [#allocation4], 1 }

</bundles_post_ra>
